<compile_context>
chip_gen: v6e
topology: v6e:2x2x1
jax: 0.10.0
libtpu: 0.0.40
codegen_flags: <defaults>
</compile_context>

<pallas_src>
import functools

import jax
import jax.numpy as jnp
from jax import lax
from jax.experimental import pallas as pl
from jax.experimental.pallas import tpu as pltpu

BN_EPS = 1e-5
_VMEM_LIMIT = 48 * 1024 * 1024  # explicit scoped-VMEM budget (headroom on v7x's 64 MiB)


def _round_up(x, m):
    return (x + m - 1) // m * m


# --------------------------------------------------------------------------- kernels
def _conv_stats_kernel(p_ref, w_ref, conv_ref, stats_ref):
    """Pass 1: conv matmul (bf16 -> f32 acc) + per-tile per-channel sum / sumsq.

    p_ref:     (TILE_R, K_pad)  bf16 im2col patch tile
    w_ref:     (K_pad, C_pad)   bf16 reshaped conv weight (resident)
    conv_ref:  (TILE_R, C_pad)  f32 conv output tile
    stats_ref: (1, 8, C_pad)    f32; row 0 = partial sum, row 1 = partial sumsq
    """
    acc = jnp.dot(p_ref[...], w_ref[...], preferred_element_type=jnp.float32)
    conv_ref[...] = acc

    s = jnp.sum(acc, axis=0, keepdims=True)           # (1, C_pad)
    ss = jnp.sum(acc * acc, axis=0, keepdims=True)    # (1, C_pad)
    row = lax.broadcasted_iota(jnp.int32, (8, acc.shape[1]), 0)
    stats = jnp.where(row == 0, s, 0.0) + jnp.where(row == 1, ss, 0.0)
    stats_ref[...] = stats[None, :, :]


def _affine_relu_kernel(conv_ref, scale_ref, shift_ref, o_ref):
    """Pass 2: y = max(conv * scale + shift, 0) with per-channel scale/shift."""
    y = conv_ref[...] * scale_ref[...] + shift_ref[...]
    o_ref[...] = jnp.maximum(y, 0.0)


# --------------------------------------------------------------------------- wrapper
def _im2col_3x3(x_nhwc):
    """3x3, stride 1, padding 1 im2col.  Returns (N*H*W, 9*C), tap-major/channel-minor."""
    n, h, w, c = x_nhwc.shape
    xp = jnp.pad(x_nhwc, ((0, 0), (1, 1), (1, 1), (0, 0)))
    cols = []
    for dy in range(3):
        for dx in range(3):
            cols.append(xp[:, dy:dy + h, dx:dx + w, :].reshape(n * h * w, c))
    return jnp.concatenate(cols, axis=-1)


def _conv_bn_relu_stage(x_nhwc, w_oihw, gamma, beta, *, tile_r=256):
    """One Conv2d(3x3, pad=1, no-bias-needed) + BatchNorm2d(train) + ReLU stage."""
    n, h, w, cin = x_nhwc.shape
    cout = w_oihw.shape[0]
    r = n * h * w
    k = 9 * cin

    # Lane-dense padding of the contraction and channel dims.
    k_pad = _round_up(k, 128)
    c_pad = _round_up(cout, 128)
    tile_r = min(tile_r, _round_up(r, 8))
    r_pad = _round_up(r, tile_r)
    num_tiles = r_pad // tile_r

    # bf16 patches for the MXU (halves DMA bytes); zero-padded rows/cols contribute
    # exactly zero to the matmul and to the BN sums (no bias), so statistics stay exact
    # as long as we divide by the true row count r.
    patches = _im2col_3x3(x_nhwc.astype(jnp.bfloat16))
    patches = jnp.pad(patches, ((0, r_pad - r), (0, k_pad - k)))

    # (Cout, Cin, 3, 3) -> (ky, kx, Cin, Cout) -> (9*Cin, Cout); tap-major, channel-minor
    # to match _im2col_3x3's column ordering.
    w_mat = jnp.transpose(w_oihw, (2, 3, 1, 0)).reshape(k, cout)
    w_mat = jnp.pad(w_mat, ((0, k_pad - k), (0, c_pad - cout))).astype(jnp.bfloat16)

    # -- pass 1: row-tiled conv + per-tile BN partial statistics ----------------------
    conv, stats = pl.pallas_call(
        _conv_stats_kernel,
        out_shape=(
            jax.ShapeDtypeStruct((r_pad, c_pad), jnp.float32),
            jax.ShapeDtypeStruct((num_tiles, 8, c_pad), jnp.float32),
        ),
        grid=(num_tiles,),
        in_specs=[
            pl.BlockSpec((tile_r, k_pad), lambda i: (i, 0)),
            pl.BlockSpec((k_pad, c_pad), lambda i: (0, 0)),
        ],
        out_specs=(
            pl.BlockSpec((tile_r, c_pad), lambda i: (i, 0)),
            pl.BlockSpec((1, 8, c_pad), lambda i: (i, 0, 0)),
        ),
        compiler_params=pltpu.CompilerParams(
            dimension_semantics=("parallel",),
            vmem_limit_bytes=_VMEM_LIMIT),
    )(patches, w_mat)

    # -- tiny global reduction + fused scale/shift (BN in training mode) --------------
    total = jnp.sum(stats, axis=0)                     # (8, c_pad)
    s, ss = total[0], total[1]
    inv_r = 1.0 / float(r)
    mean = s * inv_r
    var = jnp.maximum(ss * inv_r - mean * mean, 0.0)   # biased variance
    inv_std = lax.rsqrt(var + BN_EPS)

    gamma_p = jnp.pad(gamma.astype(jnp.float32), (0, c_pad - cout))
    beta_p = jnp.pad(beta.astype(jnp.float32), (0, c_pad - cout))
    scale = (gamma_p * inv_std).reshape(1, c_pad)
    shift = (beta_p - mean * gamma_p * inv_std).reshape(1, c_pad)

    # -- pass 2: row-tiled normalize + affine + ReLU ----------------------------------
    out = pl.pallas_call(
        _affine_relu_kernel,
        out_shape=jax.ShapeDtypeStruct((r_pad, c_pad), jnp.float32),
        grid=(num_tiles,),
        in_specs=[
            pl.BlockSpec((tile_r, c_pad), lambda i: (i, 0)),
            pl.BlockSpec((1, c_pad), lambda i: (0, 0)),
            pl.BlockSpec((1, c_pad), lambda i: (0, 0)),
        ],
        out_specs=pl.BlockSpec((tile_r, c_pad), lambda i: (i, 0)),
        compiler_params=pltpu.CompilerParams(
            dimension_semantics=("parallel",),
            vmem_limit_bytes=_VMEM_LIMIT),
    )(conv, scale, shift)

    return out[:r, :cout].reshape(n, h, w, cout)


@functools.partial(jax.jit, static_argnames=())
def double_conv(x_nchw, params):
    """DoubleConv forward.  x_nchw: (N, Cin, H, W) -> (N, Cout, H, W).

    Note: the conv biases (params["b1"], params["b2"]) are intentionally unused in the
    Pallas path — training-mode BatchNorm's mean subtraction cancels them exactly.
    """
    x = jnp.transpose(x_nchw, (0, 2, 3, 1))            # NCHW -> NHWC (module boundary)
    y = _conv_bn_relu_stage(x, params["w1"], params["g1"], params["beta1"])
    z = _conv_bn_relu_stage(y, params["w2"], params["g2"], params["beta2"])
    return jnp.transpose(z, (0, 3, 1, 2))              # NHWC -> NCHW


# --------------------------------------------------------------------------- reference
def _reference(x_nchw, params):
    """Pure-JAX reference (training-mode BN, with conv bias) for a sanity check."""
    def stage(x, w, b, g, beta):
        y = lax.conv_general_dilated(
            x, w, window_strides=(1, 1), padding=((1, 1), (1, 1)),
            dimension_numbers=("NCHW", "OIHW", "NCHW"))
        y = y + b[None, :, None, None]
        mean = jnp.mean(y, axis=(0, 2, 3), keepdims=True)
        var = jnp.mean((y - mean) ** 2, axis=(0, 2, 3), keepdims=True)
        y = (y - mean) * lax.rsqrt(var + BN_EPS)
        y = y * g[None, :, None, None] + beta[None, :, None, None]
        return jnp.maximum(y, 0.0)

    y = stage(x_nchw, params["w1"], params["b1"], params["g1"], params["beta1"])
    return stage(y, params["w2"], params["b2"], params["g2"], params["beta2"])


def make_params(key, in_channels, out_channels, mid_channels=None):
    if not mid_channels:
        mid_channels = out_channels
    ks = jax.random.split(key, 8)
    return {
        "w1": jax.random.normal(ks[0], (mid_channels, in_channels, 3, 3),
                                jnp.float32) * 0.1,
        "b1": jax.random.normal(ks[1], (mid_channels,), jnp.float32) * 0.1,
        "g1": 1.0 + 0.1 * jax.random.normal(ks[2], (mid_channels,), jnp.float32),
        "beta1": 0.1 * jax.random.normal(ks[3], (mid_channels,), jnp.float32),
        "w2": jax.random.normal(ks[4], (out_channels, mid_channels, 3, 3),
                                jnp.float32) * 0.1,
        "b2": jax.random.normal(ks[5], (out_channels,), jnp.float32) * 0.1,
        "g2": 1.0 + 0.1 * jax.random.normal(ks[6], (out_channels,), jnp.float32),
        "beta2": 0.1 * jax.random.normal(ks[7], (out_channels,), jnp.float32),
    }


if __name__ == "__main__":
    key = jax.random.PRNGKey(0)
    k_x, k_p = jax.random.split(key)

    N, C_IN, C_OUT, H, W = 2, 4, 8, 16, 16
    x = jax.random.normal(k_x, (N, C_IN, H, W), jnp.float32)
    params = make_params(k_p, C_IN, C_OUT)

    out = jax.block_until_ready(double_conv(x, params))
    ref = jax.block_until_ready(_reference(x, params))

    assert out.shape == (N, C_OUT, H, W), out.shape
    assert jnp.allclose(out, ref, rtol=2e-2, atol=2e-2), \
        float(jnp.max(jnp.abs(out - ref)))

    print("KERNEL_OK")
</pallas_src>

<mosaic_0001>
module attributes {stable_mosaic.version = 11 : i64} {
  func.func @_conv_stats_kernel(%arg0: i32, %arg1: memref<256x128xbf16, #tpu.memory_space<vmem>>, %arg2: memref<128x128xbf16, #tpu.memory_space<vmem>>, %arg3: memref<256x128xf32, #tpu.memory_space<vmem>>, %arg4: memref<1x8x128xf32, #tpu.memory_space<vmem>>) attributes {dimension_semantics = [#tpu.dimension_semantics<parallel>], iteration_bounds = array<i64: 2>, scalar_prefetch = 0 : i64, scratch_operands = 0 : i64, tpu.core_type = #tpu.core_type<tc>, window_params = [{transform_indices = @transform_0, window_bounds = array<i64: 256, 128>}, {pipeline_mode = #tpu.pipeline_mode<synchronous>, transform_indices = @transform_1, window_bounds = array<i64: 128, 128>}, {transform_indices = @transform_2, window_bounds = array<i64: 256, 128>}, {transform_indices = @transform_3, window_bounds = array<i64: 1, 8, 128>}]} {
    %c0 = arith.constant 0 : index
    %c0_0 = arith.constant 0 : index
    %0 = vector.load %arg1[%c0, %c0_0] : memref<256x128xbf16, #tpu.memory_space<vmem>>, vector<256x128xbf16>
    %c0_1 = arith.constant 0 : index
    %c0_2 = arith.constant 0 : index
    %1 = vector.load %arg2[%c0_1, %c0_2] : memref<128x128xbf16, #tpu.memory_space<vmem>>, vector<128x128xbf16>
    %cst = arith.constant dense<0.000000e+00> : vector<256x128xf32>
    %2 = tpu.matmul %0, %1, %cst {dimension_numbers = #tpu.dot_dimension_numbers<[1], [0], [0], [1], [0, 0, 1, 1], [], []>} : vector<256x128xbf16>, vector<128x128xbf16>, vector<256x128xf32> -> vector<256x128xf32>
    %c0_3 = arith.constant 0 : index
    %c0_4 = arith.constant 0 : index
    %3 = vector.load %arg3[%c0_3, %c0_4] : memref<256x128xf32, #tpu.memory_space<vmem>>, vector<256x128xf32>
    tpu.vector_store %arg3[%c0_3, %c0_4], %2 {strides = array<i32>} : memref<256x128xf32, #tpu.memory_space<vmem>>, vector<256x128xf32>,
    %cst_5 = arith.constant dense<0.000000e+00> : vector<128xf32>
    %4 = vector.multi_reduction <add>, %2, %cst_5 [0] : vector<256x128xf32> to vector<128xf32>
    %5 = vector.shape_cast %4 : vector<128xf32> to vector<1x128xf32>
    %6 = arith.mulf %2, %2 : vector<256x128xf32>
    %cst_6 = arith.constant dense<0.000000e+00> : vector<128xf32>
    %7 = vector.multi_reduction <add>, %6, %cst_6 [0] : vector<256x128xf32> to vector<128xf32>
    %8 = vector.shape_cast %7 : vector<128xf32> to vector<1x128xf32>
    %9 = tpu.iota {dimensions = array<i32: 0>} : vector<8x128xi32>
    %c0_i32 = arith.constant 0 : i32
    %10 = vector.broadcast %c0_i32 : i32 to vector<8x128xi32>
    %11 = arith.cmpi eq, %9, %10 : vector<8x128xi32>
    %cst_7 = arith.constant 0.000000e+00 : f32
    %12 = vector.shape_cast %5 : vector<1x128xf32> to vector<1x128xf32>
    %13 = vector.broadcast %12 : vector<1x128xf32> to vector<8x128xf32>
    %14 = vector.broadcast %cst_7 : f32 to vector<8x128xf32>
    %15 = arith.select %11, %13, %14 : vector<8x128xi1>, vector<8x128xf32>
    %c1_i32 = arith.constant 1 : i32
    %16 = vector.broadcast %c1_i32 : i32 to vector<8x128xi32>
    %17 = arith.cmpi eq, %9, %16 : vector<8x128xi32>
    %cst_8 = arith.constant 0.000000e+00 : f32
    %18 = vector.shape_cast %8 : vector<1x128xf32> to vector<1x128xf32>
    %19 = vector.broadcast %18 : vector<1x128xf32> to vector<8x128xf32>
    %20 = vector.broadcast %cst_8 : f32 to vector<8x128xf32>
    %21 = arith.select %17, %19, %20 : vector<8x128xi1>, vector<8x128xf32>
    %22 = arith.addf %15, %21 : vector<8x128xf32>
    %23 = vector.shape_cast %22 : vector<8x128xf32> to vector<1x8x128xf32>
    %c0_9 = arith.constant 0 : index
    %c0_10 = arith.constant 0 : index
    %c0_11 = arith.constant 0 : index
    %24 = vector.load %arg4[%c0_9, %c0_10, %c0_11] : memref<1x8x128xf32, #tpu.memory_space<vmem>>, vector<1x8x128xf32>
    tpu.vector_store %arg4[%c0_9, %c0_10, %c0_11], %23 {strides = array<i32>} : memref<1x8x128xf32, #tpu.memory_space<vmem>>, vector<1x8x128xf32>,
    return
  }
  func.func @transform_0(%arg0: i32) -> (i32, i32) {
    %c0_i32 = arith.constant 0 : i32
    %c0_i32_0 = arith.constant 0 : i32
    return %arg0, %c0_i32 : i32, i32
  }
  func.func @transform_1(%arg0: i32) -> (i32, i32) {
    %c0_i32 = arith.constant 0 : i32
    %c0_i32_0 = arith.constant 0 : i32
    %c0_i32_1 = arith.constant 0 : i32
    return %c0_i32, %c0_i32_0 : i32, i32
  }
  func.func @transform_2(%arg0: i32) -> (i32, i32) {
    %c0_i32 = arith.constant 0 : i32
    %c0_i32_0 = arith.constant 0 : i32
    return %arg0, %c0_i32 : i32, i32
  }
  func.func @transform_3(%arg0: i32) -> (i32, i32, i32) {
    %c0_i32 = arith.constant 0 : i32
    %c0_i32_0 = arith.constant 0 : i32
    %c0_i32_1 = arith.constant 0 : i32
    return %arg0, %c0_i32, %c0_i32_0 : i32, i32, i32
  }
}

module attributes {stable_mosaic.version = 11 : i64} {
  func.func @_affine_relu_kernel(%arg0: i32, %arg1: memref<256x128xf32, #tpu.memory_space<vmem>>, %arg2: memref<1x128xf32, #tpu.memory_space<vmem>>, %arg3: memref<1x128xf32, #tpu.memory_space<vmem>>, %arg4: memref<256x128xf32, #tpu.memory_space<vmem>>) attributes {dimension_semantics = [#tpu.dimension_semantics<parallel>], iteration_bounds = array<i64: 2>, scalar_prefetch = 0 : i64, scratch_operands = 0 : i64, tpu.core_type = #tpu.core_type<tc>, window_params = [{transform_indices = @transform_0, window_bounds = array<i64: 256, 128>}, {pipeline_mode = #tpu.pipeline_mode<synchronous>, transform_indices = @transform_1, window_bounds = array<i64: 1, 128>}, {pipeline_mode = #tpu.pipeline_mode<synchronous>, transform_indices = @transform_2, window_bounds = array<i64: 1, 128>}, {transform_indices = @transform_3, window_bounds = array<i64: 256, 128>}]} {
    %c0 = arith.constant 0 : index
    %c0_0 = arith.constant 0 : index
    %0 = vector.load %arg1[%c0, %c0_0] : memref<256x128xf32, #tpu.memory_space<vmem>>, vector<256x128xf32>
    %c0_1 = arith.constant 0 : index
    %c0_2 = arith.constant 0 : index
    %1 = vector.load %arg2[%c0_1, %c0_2] : memref<1x128xf32, #tpu.memory_space<vmem>>, vector<1x128xf32>
    %2 = vector.broadcast %1 : vector<1x128xf32> to vector<256x128xf32>
    %3 = arith.mulf %0, %2 : vector<256x128xf32>
    %c0_3 = arith.constant 0 : index
    %c0_4 = arith.constant 0 : index
    %4 = vector.load %arg3[%c0_3, %c0_4] : memref<1x128xf32, #tpu.memory_space<vmem>>, vector<1x128xf32>
    %5 = vector.broadcast %4 : vector<1x128xf32> to vector<256x128xf32>
    %6 = arith.addf %3, %5 : vector<256x128xf32>
    %cst = arith.constant 0.000000e+00 : f32
    %7 = vector.broadcast %cst : f32 to vector<256x128xf32>
    %8 = arith.maximumf %6, %7 : vector<256x128xf32>
    %c0_5 = arith.constant 0 : index
    %c0_6 = arith.constant 0 : index
    %9 = vector.load %arg4[%c0_5, %c0_6] : memref<256x128xf32, #tpu.memory_space<vmem>>, vector<256x128xf32>
    tpu.vector_store %arg4[%c0_5, %c0_6], %8 {strides = array<i32>} : memref<256x128xf32, #tpu.memory_space<vmem>>, vector<256x128xf32>,
    return
  }
  func.func @transform_0(%arg0: i32) -> (i32, i32) {
    %c0_i32 = arith.constant 0 : i32
    %c0_i32_0 = arith.constant 0 : i32
    return %arg0, %c0_i32 : i32, i32
  }
  func.func @transform_1(%arg0: i32) -> (i32, i32) {
    %c0_i32 = arith.constant 0 : i32
    %c0_i32_0 = arith.constant 0 : i32
    %c0_i32_1 = arith.constant 0 : i32
    return %c0_i32, %c0_i32_0 : i32, i32
  }
  func.func @transform_2(%arg0: i32) -> (i32, i32) {
    %c0_i32 = arith.constant 0 : i32
    %c0_i32_0 = arith.constant 0 : i32
    %c0_i32_1 = arith.constant 0 : i32
    return %c0_i32, %c0_i32_0 : i32, i32
  }
  func.func @transform_3(%arg0: i32) -> (i32, i32) {
    %c0_i32 = arith.constant 0 : i32
    %c0_i32_0 = arith.constant 0 : i32
    return %arg0, %c0_i32 : i32, i32
  }
}

</mosaic_0001>

<bundles_post_ra>
// kernel: double_conv.5
= control target key start
LH: loop header
LB: loop body
LE: loop exit
PB: predicated region body
PF: predicated region fallthrough
CT: control target
= control target key end

     0   :  { %s453_s12 = smov 0   ;;  %s612_s0 = inlined_call_operand.vmem [shape: f32[512,128], index: 0, kind: input, shape index: {}]   ;;  %s613_s1 = inlined_call_operand.vmem [shape: f32[1,128], index: 1, kind: input, shape index: {}]   ;;  %s614_s2 = inlined_call_operand.vmem [shape: f32[1,128], index: 2, kind: input, shape index: {}]   ;;  %s615_s3 = inlined_call_operand.vmem [shape: f32[512,128], index: 3, kind: output, shape index: {}]  }
   0x1 LB: > { %s404_s13 = sadd.s32 4294967295, %s431_s12   ;;  %p408_p0 = scmp.ge.s32.totalorder %s431_s12, 1  ;;  %s431_s12 = sphi %s453_s12, %s13_s12  }
   0x2   : > { %p138_p1 = scmp.lt.s32.totalorder %s431_s12, 3 }
   0x4   : > { %p139_p2 = pnand %p408_p0, %p138_p1 }
   0x5   : > { %s409_s14 = sshll.u32 (!%p139_p2), %s404_s13, 5 }
   0x6   : > { %142 = sbr.rel (%p139_p2) target bundleno = 44 (0x2c), region = 32  ;;  %p163_p3 = scmp.lt.s32.totalorder (!%p139_p2), %s409_s14, 63 }
   0xb   : > { %s617_s14 = smov (!%p163_p3, %s409_s14), 63  ;;  %v464_v0 = vld [vmem:[%s613_s1] ss:$0 sm:$0xff] }
   0xc   : > { %s410_s15 = sshll.u32 %s617_s14, 3  ;;  %v474_v1 = vld [vmem:[%s614_s2] ss:$0 sm:$0xff] }
   0xd   : > { %s469_s20 = scalar_lea.vmem %s612_s0, %s410_s15  ;;  %s497_s25 = scalar_lea.vmem %s615_s3, %s410_s15 }
   0xe   : > { %v174_v2 = vld [vmem:[%s469_s20] sm:$0xff]  ;;  %v175_v3 = vld [vmem:[%s469_s20 + $0x8] sm:$0xff]  ;;  %v176_v4 = vld [vmem:[%s469_s20 + $0x10] sm:$0xff] }
   0xf   : > { %v213_v5 = vmul.f32 %v464_v0, %v174_v2  ;;  %v214_v6 = vmul.f32 %v464_v0, %v175_v3  ;;  %v215_v7 = vmul.f32 %v464_v0, %v176_v4  ;;  %v177_v8 = vld [vmem:[%s469_s20 + $0x18] sm:$0xff]  ;;  %v178_v9 = vld [vmem:[%s469_s20 + $0x20] sm:$0xff]  ;;  %v179_v10 = vld [vmem:[%s469_s20 + $0x28] sm:$0xff] }
  0x10   : > { %v216_v11 = vmul.f32 %v464_v0, %v177_v8  ;;  %v217_v12 = vmul.f32 %v464_v0, %v178_v9  ;;  %v218_v13 = vmul.f32 %v464_v0, %v179_v10  ;;  %v180_v14 = vld [vmem:[%s469_s20 + $0x30] sm:$0xff]  ;;  %v181_v15 = vld [vmem:[%s469_s20 + $0x38] sm:$0xff]  ;;  %v182_v24 = vld [vmem:[%s469_s20 + $0x40] sm:$0xff] }
  0x11   : > { %v252_v16 = vadd.f32 %v474_v1, %v213_v5  ;;  %v253_v17 = vadd.f32 %v474_v1, %v214_v6  ;;  %v254_v18 = vadd.f32 %v474_v1, %v215_v7  ;;  %v219_v19 = vmul.f32 %v464_v0, %v180_v14  ;;  %v183_v25 = vld [vmem:[%s469_s20 + $0x48] sm:$0xff]  ;;  %v184_v26 = vld [vmem:[%s469_s20 + $0x50] sm:$0xff]  ;;  %v185_v31 = vld [vmem:[%s469_s20 + $0x58] sm:$0xff] }
  0x12   : > { %v255_v20 = vadd.f32 %v474_v1, %v216_v11  ;;  %v256_v21 = vadd.f32 %v474_v1, %v217_v12  ;;  %v257_v22 = vadd.f32 %v474_v1, %v218_v13  ;;  %v220_v23 = vmul.f32 %v464_v0, %v181_v15  ;;  %v186_v32 = vld [vmem:[%s469_s20 + $0x60] sm:$0xff]  ;;  %v187_v33 = vld [vmem:[%s469_s20 + $0x68] sm:$0xff]  ;;  %v188_v38 = vld [vmem:[%s469_s20 + $0x70] sm:$0xff] }
  0x13   : > { %v284_v27 = vmax.f32 %v252_v16, 0.0  ;;  %v285_v28 = vmax.f32 %v253_v17, 0.0  ;;  %v286_v29 = vmax.f32 %v254_v18, 0.0  ;;  %v258_v30 = vadd.f32 %v474_v1, %v219_v19  ;;  %v189_v43 = vld [vmem:[%s469_s20 + $0x78] sm:$0xff]  ;;  %v190_v56 = vld [vmem:[%s469_s20 + $0x80] sm:$0xff]  ;;  %v191_v57 = vld [vmem:[%s469_s20 + $0x88] sm:$0xff] }
  0x14   : > { %v287_v34 = vmax.f32 %v255_v20, 0.0  ;;  %v288_v35 = vmax.f32 %v256_v21, 0.0  ;;  %v289_v36 = vmax.f32 %v257_v22, 0.0  ;;  %v259_v37 = vadd.f32 %v474_v1, %v220_v23  ;;  %v192_v58 = vld [vmem:[%s469_s20 + $0x90] sm:$0xff]  ;;  %v193_v63 = vld [vmem:[%s469_s20 + $0x98] sm:$0xff]  ;;  %v194_v2 = vld [vmem:[%s469_s20 + $0xa0] sm:$0xff] }
  0x15   : > { %316 = vst [vmem:[%s497_s25] sm:$0xff] %v284_v27  ;;  %317 = vst [vmem:[%s497_s25 + $0x8] sm:$0xff] %v285_v28  ;;  %v290_v39 = vmax.f32 %v258_v30, 0.0  ;;  %v221_v40 = vmul.f32 %v464_v0, %v182_v24  ;;  %v222_v41 = vmul.f32 %v464_v0, %v183_v25  ;;  %v223_v42 = vmul.f32 %v464_v0, %v184_v26  ;;  %v195_v3 = vld [vmem:[%s469_s20 + $0xa8] sm:$0xff]  ;;  %v196_v8 = vld [vmem:[%s469_s20 + $0xb0] sm:$0xff] }
  0x16   : > { %318 = vst [vmem:[%s497_s25 + $0x10] sm:$0xff] %v286_v29  ;;  %319 = vst [vmem:[%s497_s25 + $0x18] sm:$0xff] %v287_v34  ;;  %v291_v44 = vmax.f32 %v259_v37, 0.0  ;;  %v224_v45 = vmul.f32 %v464_v0, %v185_v31  ;;  %v225_v46 = vmul.f32 %v464_v0, %v186_v32  ;;  %v226_v47 = vmul.f32 %v464_v0, %v187_v33  ;;  %v197_v13 = vld [vmem:[%s469_s20 + $0xb8] sm:$0xff]  ;;  %v198_v26 = vld [vmem:[%s469_s20 + $0xc0] sm:$0xff] }
  0x17   : > { %320 = vst [vmem:[%s497_s25 + $0x20] sm:$0xff] %v288_v35  ;;  %321 = vst [vmem:[%s497_s25 + $0x28] sm:$0xff] %v289_v36  ;;  %v260_v48 = vadd.f32 %v474_v1, %v221_v40  ;;  %v261_v49 = vadd.f32 %v474_v1, %v222_v41  ;;  %v262_v50 = vadd.f32 %v474_v1, %v223_v42  ;;  %v199_v27 = vld [vmem:[%s469_s20 + $0xc8] sm:$0xff]  ;;  %v200_v28 = vld [vmem:[%s469_s20 + $0xd0] sm:$0xff] }
  0x18   : > { %322 = vst [vmem:[%s497_s25 + $0x30] sm:$0xff] %v290_v39  ;;  %v227_v51 = vmul.f32 %v464_v0, %v188_v38  ;;  %323 = vst [vmem:[%s497_s25 + $0x38] sm:$0xff] %v291_v44  ;;  %v263_v52 = vadd.f32 %v474_v1, %v224_v45  ;;  %v264_v53 = vadd.f32 %v474_v1, %v225_v46  ;;  %v201_v33 = vld [vmem:[%s469_s20 + $0xd8] sm:$0xff]  ;;  %v202_v34 = vld [vmem:[%s469_s20 + $0xe0] sm:$0xff] }
  0x19   : > { %v265_v54 = vadd.f32 %v474_v1, %v226_v47  ;;  %v228_v55 = vmul.f32 %v464_v0, %v189_v43  ;;  %v292_v59 = vmax.f32 %v260_v48, 0.0  ;;  %v293_v60 = vmax.f32 %v261_v49, 0.0  ;;  %v203_v35 = vld [vmem:[%s469_s20 + $0xe8] sm:$0xff]  ;;  %v204_v40 = vld [vmem:[%s469_s20 + $0xf0] sm:$0xff]  ;;  %v205_v45 = vld [vmem:[%s469_s20 + $0xf8] sm:$0xff] }
  0x1a   : > { %v294_v61 = vmax.f32 %v262_v50, 0.0  ;;  %v266_v62 = vadd.f32 %v474_v1, %v227_v51  ;;  %v295_v4 = vmax.f32 %v263_v52, 0.0  ;;  %v296_v5 = vmax.f32 %v264_v53, 0.0 }
  0x1b   : > { %v297_v6 = vmax.f32 %v265_v54, 0.0  ;;  %v267_v7 = vadd.f32 %v474_v1, %v228_v55  ;;  %324 = vst [vmem:[%s497_s25 + $0x40] sm:$0xff] %v292_v59  ;;  %325 = vst [vmem:[%s497_s25 + $0x48] sm:$0xff] %v293_v60  ;;  %v229_v10 = vmul.f32 %v464_v0, %v190_v56  ;;  %v230_v11 = vmul.f32 %v464_v0, %v191_v57 }
  0x1c   : > { %326 = vst [vmem:[%s497_s25 + $0x50] sm:$0xff] %v294_v61  ;;  %v298_v9 = vmax.f32 %v266_v62, 0.0  ;;  %v231_v12 = vmul.f32 %v464_v0, %v192_v58  ;;  %327 = vst [vmem:[%s497_s25 + $0x58] sm:$0xff] %v295_v4  ;;  %v232_v15 = vmul.f32 %v464_v0, %v193_v63  ;;  %v233_v16 = vmul.f32 %v464_v0, %v194_v2 }
  0x1d   : > { %328 = vst [vmem:[%s497_s25 + $0x60] sm:$0xff] %v296_v5  ;;  %329 = vst [vmem:[%s497_s25 + $0x68] sm:$0xff] %v297_v6  ;;  %v299_v14 = vmax.f32 %v267_v7, 0.0  ;;  %v234_v17 = vmul.f32 %v464_v0, %v195_v3  ;;  %v268_v18 = vadd.f32 %v474_v1, %v229_v10  ;;  %v269_v19 = vadd.f32 %v474_v1, %v230_v11 }
  0x1e   : > { %330 = vst [vmem:[%s497_s25 + $0x70] sm:$0xff] %v298_v9  ;;  %v270_v20 = vadd.f32 %v474_v1, %v231_v12  ;;  %v235_v21 = vmul.f32 %v464_v0, %v196_v8  ;;  %v271_v22 = vadd.f32 %v474_v1, %v232_v15  ;;  %v272_v23 = vadd.f32 %v474_v1, %v233_v16 }
  0x1f   : > { %331 = vst [vmem:[%s497_s25 + $0x78] sm:$0xff] %v299_v14  ;;  %v273_v24 = vadd.f32 %v474_v1, %v234_v17  ;;  %v236_v25 = vmul.f32 %v464_v0, %v197_v13  ;;  %v300_v29 = vmax.f32 %v268_v18, 0.0  ;;  %v301_v30 = vmax.f32 %v269_v19, 0.0 }
  0x20   : > { %v302_v31 = vmax.f32 %v270_v20, 0.0  ;;  %v274_v32 = vadd.f32 %v474_v1, %v235_v21  ;;  %v303_v36 = vmax.f32 %v271_v22, 0.0  ;;  %v304_v37 = vmax.f32 %v272_v23, 0.0 }
  0x21   : > { %v305_v38 = vmax.f32 %v273_v24, 0.0  ;;  %v275_v39 = vadd.f32 %v474_v1, %v236_v25  ;;  %332 = vst [vmem:[%s497_s25 + $0x80] sm:$0xff] %v300_v29  ;;  %333 = vst [vmem:[%s497_s25 + $0x88] sm:$0xff] %v301_v30  ;;  %v237_v42 = vmul.f32 %v464_v0, %v198_v26  ;;  %v238_v43 = vmul.f32 %v464_v0, %v199_v27 }
  0x22   : > { %334 = vst [vmem:[%s497_s25 + $0x90] sm:$0xff] %v302_v31  ;;  %v306_v41 = vmax.f32 %v274_v32, 0.0  ;;  %v239_v44 = vmul.f32 %v464_v0, %v200_v28  ;;  %335 = vst [vmem:[%s497_s25 + $0x98] sm:$0xff] %v303_v36  ;;  %v240_v47 = vmul.f32 %v464_v0, %v201_v33  ;;  %v241_v48 = vmul.f32 %v464_v0, %v202_v34 }
  0x23   : > { %336 = vst [vmem:[%s497_s25 + $0xa0] sm:$0xff] %v304_v37  ;;  %337 = vst [vmem:[%s497_s25 + $0xa8] sm:$0xff] %v305_v38  ;;  %v307_v46 = vmax.f32 %v275_v39, 0.0  ;;  %v242_v49 = vmul.f32 %v464_v0, %v203_v35  ;;  %v276_v50 = vadd.f32 %v474_v1, %v237_v42  ;;  %v277_v51 = vadd.f32 %v474_v1, %v238_v43 }
  0x24   : > { %338 = vst [vmem:[%s497_s25 + $0xb0] sm:$0xff] %v306_v41  ;;  %v278_v52 = vadd.f32 %v474_v1, %v239_v44  ;;  %v243_v53 = vmul.f32 %v464_v0, %v204_v40  ;;  %v279_v54 = vadd.f32 %v474_v1, %v240_v47  ;;  %v280_v55 = vadd.f32 %v474_v1, %v241_v48 }
  0x25   : > { %339 = vst [vmem:[%s497_s25 + $0xb8] sm:$0xff] %v307_v46  ;;  %v281_v56 = vadd.f32 %v474_v1, %v242_v49  ;;  %v244_v57 = vmul.f32 %v464_v0, %v205_v45  ;;  %v308_v58 = vmax.f32 %v276_v50, 0.0  ;;  %v309_v59 = vmax.f32 %v277_v51, 0.0 }
  0x26   : > { %v310_v60 = vmax.f32 %v278_v52, 0.0  ;;  %v282_v61 = vadd.f32 %v474_v1, %v243_v53  ;;  %v311_v62 = vmax.f32 %v279_v54, 0.0  ;;  %v312_v63 = vmax.f32 %v280_v55, 0.0 }
  0x27   : > { %v313_v2 = vmax.f32 %v281_v56, 0.0  ;;  %v283_v3 = vadd.f32 %v474_v1, %v244_v57  ;;  %340 = vst [vmem:[%s497_s25 + $0xc0] sm:$0xff] %v308_v58  ;;  %341 = vst [vmem:[%s497_s25 + $0xc8] sm:$0xff] %v309_v59 }
  0x28   : > { %342 = vst [vmem:[%s497_s25 + $0xd0] sm:$0xff] %v310_v60  ;;  %v314_v4 = vmax.f32 %v282_v61, 0.0  ;;  %343 = vst [vmem:[%s497_s25 + $0xd8] sm:$0xff] %v311_v62 }
  0x29   : > { %344 = vst [vmem:[%s497_s25 + $0xe0] sm:$0xff] %v312_v63  ;;  %345 = vst [vmem:[%s497_s25 + $0xe8] sm:$0xff] %v313_v2  ;;  %v315_v0 = vmax.f32 %v283_v3, 0.0 }
  0x2a   : > { %346 = vst [vmem:[%s497_s25 + $0xf0] sm:$0xff] %v314_v4 }
  0x2b   : > { %347 = vst [vmem:[%s497_s25 + $0xf8] sm:$0xff] %v315_v0 }
  0x2c PF: > { %s13_s12 = sadd.s32 1, %s431_s12  }
  0x2d   : > { %p10_p4 = scmp.ge.s32.totalorder %s13_s12, 4  }
  0x2f   :  { %12 = sbr.rel (!%p10_p4) target bundleno = 1 (0x1), region = 62 }

// kernel: double_conv.4
= control target key start
LH: loop header
LB: loop body
LE: loop exit
PB: predicated region body
PF: predicated region fallthrough
CT: control target
= control target key end

     0   :  { %s956_s12 = smov 0   ;;  %s1145_s0 = inlined_call_operand.vmem [shape: bf16[512,128], index: 0, kind: input, shape index: {}]   ;;  %s1146_s1 = inlined_call_operand.vmem [shape: bf16[128,128], index: 1, kind: input, shape index: {}]   ;;  %s1147_s2 = inlined_call_operand.vmem [shape: f32[512,128], index: 2, kind: output, shape index: {0}]   ;;  %s1148_s3 = inlined_call_operand.vmem [shape: f32[2,8,128], index: 3, kind: output, shape index: {1}]  }
   0x1 LB: > { %s962_s13 = sadd.s32 4294967295, %s934_s12   ;;  %p776_p0 = scmp.ge.s32.totalorder %s934_s12, 1  ;;  %s934_s12 = sphi %s956_s12, %s14_s12  }
   0x2   : > { %p141_p1 = scmp.lt.s32.totalorder %s934_s12, 3 }
   0x4   : > { %p142_p2 = pnand %p776_p0, %p141_p1 }
   0x5   : > { %s777_s16 = sshll.u32 (!%p142_p2), %s962_s13, 5  ;;  %p181_p4 = scmp.lt.s32.totalorder (!%p142_p2), %s962_s13, 1 }
   0x6   : > { %145 = sbr.rel (%p142_p2) target bundleno = 323 (0x143), region = 28  ;;  %p170_p3 = scmp.lt.s32.totalorder (!%p142_p2), %s777_s16, 63 }
   0xb   : > { %v904_v0 = vld [vmem:[%s1146_s1 + $0x38] sm:$0xff]   ;;  %v905_v1 = vld [vmem:[%s1146_s1 + $0x30] sm:$0xff]   ;;  %s1150_s16 = smov (!%p170_p3, %s777_s16), 63  ;;  %v906_v2 = vld [vmem:[%s1146_s1 + $0x28] sm:$0xff]   ;;  %s1152_s13 = smov (!%p181_p4, %s962_s13), 1 }
   0xc   : > { %832 = vmatprep.subr.bf16.mxu0 %v904_v0  ;;  %880 = vmatprep.subr.bf16.mxu1 %v904_v0  ;;  %s778_s21 = sshll.u32 %s1150_s16, 2  ;;  %v907_v3 = vld [vmem:[%s1146_s1 + $0x20] sm:$0xff]   ;;  %v908_v5 = vld [vmem:[%s1146_s1 + $0x18] sm:$0xff]   ;;  %v909_v6 = vld [vmem:[%s1146_s1 + $0x10] sm:$0xff]   ;;  %s780_s8 = sshll.u32 %s1150_s16, 3 }
   0xd   : > { %833 = vmatpush3.bf16.msra.mxu0 %v904_v0  ;;  %888 = vmatpush3.bf16.msra.mxu1 %v904_v0  ;;  %s982_s24 = scalar_lea.vmem %s1145_s0, %s778_s21  ;;  %v910_v8 = vld [vmem:[%s1146_s1 + $0x8] sm:$0xff]   ;;  %v911_v9 = vld [vmem:[%s1146_s1] sm:$0xff]   ;;  %s1019_s11 = scalar_lea.vmem %s1147_s2, %s780_s8 }
   0xe   : > { %834 = vmatprep.subr.bf16.mxu0 %v905_v1  ;;  %881 = vmatprep.subr.bf16.mxu1 %v905_v1  ;;  %v912_v4 = vld [vmem:[%s982_s24] sm:$0xff]   ;;  %v913_v10 = vld [vmem:[%s982_s24 + $0x8] sm:$0xff]   ;;  %v914_v12 = vld [vmem:[%s982_s24 + $0x10] sm:$0xff]   ;;  %s781_s14 = sshll.u32 %s1152_s13, 3 }
   0xf   : > { %848 = vmatprep.mubr.bf16.mxu0 %v912_v4  ;;  %v920_v7 = vld [vmem:[%s982_s24 + $0x40] sm:$0xff]   ;;  %v921_v11 = vld [vmem:[%s982_s24 + $0x48] sm:$0xff]   ;;  %v922_v13 = vld [vmem:[%s982_s24 + $0x50] sm:$0xff]   ;;  %s184_s17 = scalar_lea.vmem %s1148_s3, %s781_s14 }
  0x10   : > { %864 = vmatprep.mubr.bf16.mxu1 %v920_v7  ;;  %v915_v14 = vld [vmem:[%s982_s24 + $0x18] sm:$0xff]   ;;  %v916_v16 = vld [vmem:[%s982_s24 + $0x20] sm:$0xff]   ;;  %v917_v18 = vld [vmem:[%s982_s24 + $0x28] sm:$0xff]  }
  0x11   : > { %835 = vmatpush3.bf16.msra.mxu0 %v905_v1  ;;  %889 = vmatpush3.bf16.msra.mxu1 %v905_v1  ;;  %v923_v15 = vld [vmem:[%s982_s24 + $0x58] sm:$0xff]   ;;  %v924_v17 = vld [vmem:[%s982_s24 + $0x60] sm:$0xff]   ;;  %v925_v19 = vld [vmem:[%s982_s24 + $0x68] sm:$0xff]  }
  0x12   : > { %836 = vmatprep.subr.bf16.mxu0 %v906_v2  ;;  %882 = vmatprep.subr.bf16.mxu1 %v906_v2  ;;  %v918_v20 = vld [vmem:[%s982_s24 + $0x30] sm:$0xff]   ;;  %v919_v22 = vld [vmem:[%s982_s24 + $0x38] sm:$0xff]  }
  0x13   : > { %v926_v21 = vld [vmem:[%s982_s24 + $0x70] sm:$0xff]   ;;  %v927_v23 = vld [vmem:[%s982_s24 + $0x78] sm:$0xff]  }
  0x15   : > { %837 = vmatpush3.bf16.msra.mxu0 %v906_v2  ;;  %890 = vmatpush3.bf16.msra.mxu1 %v906_v2 }
  0x16   : > { %838 = vmatprep.subr.bf16.mxu0 %v907_v3  ;;  %883 = vmatprep.subr.bf16.mxu1 %v907_v3 }
  0x19   : > { %839 = vmatpush3.bf16.msra.mxu0 %v907_v3  ;;  %891 = vmatpush3.bf16.msra.mxu1 %v907_v3 }
  0x1a   : > { %840 = vmatprep.subr.bf16.mxu0 %v908_v5  ;;  %884 = vmatprep.subr.bf16.mxu1 %v908_v5 }
  0x1d   : > { %841 = vmatpush3.bf16.msra.mxu0 %v908_v5  ;;  %892 = vmatpush3.bf16.msra.mxu1 %v908_v5 }
  0x1e   : > { %842 = vmatprep.subr.bf16.mxu0 %v909_v6  ;;  %885 = vmatprep.subr.bf16.mxu1 %v909_v6 }
  0x21   : > { %843 = vmatpush3.bf16.msra.mxu0 %v909_v6  ;;  %893 = vmatpush3.bf16.msra.mxu1 %v909_v6 }
  0x22   : > { %844 = vmatprep.subr.bf16.mxu0 %v910_v8  ;;  %886 = vmatprep.subr.bf16.mxu1 %v910_v8 }
  0x25   : > { %845 = vmatpush3.bf16.msra.mxu0 %v910_v8  ;;  %894 = vmatpush3.bf16.msra.mxu1 %v910_v8 }
  0x26   : > { %846 = vmatprep.subr.bf16.mxu0 %v911_v9  ;;  %887 = vmatprep.subr.bf16.mxu1 %v911_v9 }
  0x29   : > { %847 = vmatpush3.bf16.msra.mxu0 %v911_v9  ;;  %895 = vmatpush3.bf16.msra.mxu1 %v911_v9 }
  0x2c   : > { %849 = vmatmul.mubr.bf16.vlgmr.msra.gmra.mxu0 %v913_v10  ;;  %865 = vmatmul.mubr.bf16.vlgmr.msra.gmra.mxu1 %v921_v11 }
  0x2d   : > { %852 = vmatprep.mubr.bf16.mxu0 %v914_v12  ;;  %868 = vmatprep.mubr.bf16.mxu1 %v922_v13 }
  0x34   : > { %853 = vmatmul.mubr.bf16.gmra.mxu0 %v915_v14  ;;  %869 = vmatmul.mubr.bf16.gmra.mxu1 %v923_v15 }
  0x35   : > { %856 = vmatprep.mubr.bf16.mxu0 %v916_v16  ;;  %872 = vmatprep.mubr.bf16.mxu1 %v924_v17 }
  0x3c   : > { %857 = vmatmul.mubr.bf16.gmra.mxu0 %v917_v18  ;;  %873 = vmatmul.mubr.bf16.gmra.mxu1 %v925_v19 }
  0x3d   : > { %860 = vmatprep.mubr.bf16.mxu0 %v918_v20  ;;  %876 = vmatprep.mubr.bf16.mxu1 %v926_v21 }
  0x44   : > { %861 = vmatmul.mubr.bf16.gmra.mxu0 %v919_v22  ;;  %877 = vmatmul.mubr.bf16.gmra.mxu1 %v927_v23 }
  0xec   : > { %v850_v24 = vpop.f32.mrf.mxu0  ;;  %v1021_v25 = vpop.f32.mrf.mxu1 }
  0xed   : > { %541 = vst [vmem:[%s1019_s11 + $0x10] sm:$0xff] %v850_v24  ;;  %557 = vst [vmem:[%s1019_s11 + $0x90] sm:$0xff] %v1021_v25  ;;  %v610_v37 = vmul.f32 %v850_v24, %v850_v24 }
  0xee   : > { %v412_v26 = vpop.f32.mrf.mxu0  ;;  %v1026_v27 = vpop.f32.mrf.mxu1 }
  0xef   : > { %539 = vst [vmem:[%s1019_s11] sm:$0xff] %v412_v26  ;;  %555 = vst [vmem:[%s1019_s11 + $0x80] sm:$0xff] %v1026_v27  ;;  %v608_v32 = vmul.f32 %v412_v26, %v412_v26 }
  0xf0   : > { %v851_v28 = vpop.f32.mrf.mxu0  ;;  %v1031_v29 = vpop.f32.mrf.mxu1 }
  0xf1   : > { %542 = vst [vmem:[%s1019_s11 + $0x18] sm:$0xff] %v851_v28  ;;  %558 = vst [vmem:[%s1019_s11 + $0x98] sm:$0xff] %v1031_v29  ;;  %v611_v42 = vmul.f32 %v851_v28, %v851_v28 }
  0xf2   : > { %v415_v30 = vpop.f32.mrf.mxu0  ;;  %v1036_v31 = vpop.f32.mrf.mxu1 }
  0xf3   : > { %540 = vst [vmem:[%s1019_s11 + $0x8] sm:$0xff] %v415_v30  ;;  %v571_v33 = vadd.f32 %v415_v30, %v412_v26  ;;  %v609_v34 = vmul.f32 %v415_v30, %v415_v30  ;;  %556 = vst [vmem:[%s1019_s11 + $0x88] sm:$0xff] %v1036_v31 }
  0xf4   : > { %v854_v35 = vpop.f32.mrf.mxu0  ;;  %v1041_v36 = vpop.f32.mrf.mxu1 }
  0xf5   : > { %v572_v38 = vadd.f32 %v850_v24, %v571_v33  ;;  %v640_v39 = vadd.f32 %v609_v34, %v608_v32  ;;  %545 = vst [vmem:[%s1019_s11 + $0x30] sm:$0xff] %v854_v35  ;;  %561 = vst [vmem:[%s1019_s11 + $0xb0] sm:$0xff] %v1041_v36  ;;  %v614_v57 = vmul.f32 %v854_v35, %v854_v35 }
  0xf6   : > { %v428_v40 = vpop.f32.mrf.mxu0  ;;  %v1046_v41 = vpop.f32.mrf.mxu1 }
  0xf7   : > { %v641_v43 = vadd.f32 %v640_v39, %v610_v37  ;;  %543 = vst [vmem:[%s1019_s11 + $0x20] sm:$0xff] %v428_v40  ;;  %v573_v44 = vadd.f32 %v851_v28, %v572_v38  ;;  %559 = vst [vmem:[%s1019_s11 + $0xa0] sm:$0xff] %v1046_v41  ;;  %v612_v48 = vmul.f32 %v428_v40, %v428_v40 }
  0xf8   : > { %v855_v45 = vpop.f32.mrf.mxu0  ;;  %v1051_v46 = vpop.f32.mrf.mxu1 }
  0xf9   : > { %v574_v47 = vadd.f32 %v573_v44, %v428_v40  ;;  %v642_v49 = vadd.f32 %v641_v43, %v611_v42  ;;  %546 = vst [vmem:[%s1019_s11 + $0x38] sm:$0xff] %v855_v45  ;;  %562 = vst [vmem:[%s1019_s11 + $0xb8] sm:$0xff] %v1051_v46  ;;  %v615_v62 = vmul.f32 %v855_v45, %v855_v45 }
  0xfa   : > { %v431_v50 = vpop.f32.mrf.mxu0  ;;  %v1056_v51 = vpop.f32.mrf.mxu1  ;;  %v624_v43 = vmul.f32 %v1026_v27, %v1026_v27 }
  0xfb   : > { %v643_v52 = vadd.f32 %v642_v49, %v612_v48  ;;  %544 = vst [vmem:[%s1019_s11 + $0x28] sm:$0xff] %v431_v50  ;;  %v575_v53 = vadd.f32 %v574_v47, %v431_v50  ;;  %v613_v54 = vmul.f32 %v431_v50, %v431_v50  ;;  %560 = vst [vmem:[%s1019_s11 + $0xa8] sm:$0xff] %v1056_v51 }
  0xfc   : > { %v858_v55 = vpop.f32.mrf.mxu0  ;;  %v1061_v56 = vpop.f32.mrf.mxu1  ;;  %v625_v48 = vmul.f32 %v1036_v31, %v1036_v31  ;;  %v626_v50 = vmul.f32 %v1021_v25, %v1021_v25 }
  0xfd   : > { %v576_v58 = vadd.f32 %v854_v35, %v575_v53  ;;  %v644_v59 = vadd.f32 %v643_v52, %v613_v54  ;;  %549 = vst [vmem:[%s1019_s11 + $0x50] sm:$0xff] %v858_v55  ;;  %565 = vst [vmem:[%s1019_s11 + $0xd0] sm:$0xff] %v1061_v56  ;;  %v618_v13 = vmul.f32 %v858_v55, %v858_v55 }
  0xfe   : > { %v444_v60 = vpop.f32.mrf.mxu0  ;;  %v1066_v61 = vpop.f32.mrf.mxu1  ;;  %v627_v54 = vmul.f32 %v1031_v29, %v1031_v29 }
  0xff   : > { %v645_v63 = vadd.f32 %v644_v59, %v614_v57  ;;  %547 = vst [vmem:[%s1019_s11 + $0x40] sm:$0xff] %v444_v60  ;;  %v577_v0 = vadd.f32 %v855_v45, %v576_v58  ;;  %563 = vst [vmem:[%s1019_s11 + $0xc0] sm:$0xff] %v1066_v61  ;;  %v616_v4 = vmul.f32 %v444_v60, %v444_v60 }
 0x100   : > { %v859_v1 = vpop.f32.mrf.mxu0  ;;  %v1071_v2 = vpop.f32.mrf.mxu1  ;;  %v628_v58 = vmul.f32 %v1046_v41, %v1046_v41 }
 0x101   : > { %v578_v3 = vadd.f32 %v577_v0, %v444_v60  ;;  %v646_v5 = vadd.f32 %v645_v63, %v615_v62  ;;  %550 = vst [vmem:[%s1019_s11 + $0x58] sm:$0xff] %v859_v1  ;;  %566 = vst [vmem:[%s1019_s11 + $0xd8] sm:$0xff] %v1071_v2  ;;  %v619_v18 = vmul.f32 %v859_v1, %v859_v1 }
 0x102   : > { %v447_v6 = vpop.f32.mrf.mxu0  ;;  %v1076_v7 = vpop.f32.mrf.mxu1  ;;  %v629_v62 = vmul.f32 %v1056_v51, %v1056_v51 }
 0x103   : > { %v647_v8 = vadd.f32 %v646_v5, %v616_v4  ;;  %548 = vst [vmem:[%s1019_s11 + $0x48] sm:$0xff] %v447_v6  ;;  %v579_v9 = vadd.f32 %v578_v3, %v447_v6  ;;  %v617_v10 = vmul.f32 %v447_v6, %v447_v6  ;;  %564 = vst [vmem:[%s1019_s11 + $0xc8] sm:$0xff] %v1076_v7 }
 0x104   : > { %v862_v11 = vpop.f32.mrf.mxu0  ;;  %v1081_v12 = vpop.f32.mrf.mxu1  ;;  %v632_v4 = vmul.f32 %v1066_v61, %v1066_v61 }
 0x105   : > { %v580_v14 = vadd.f32 %v858_v55, %v579_v9  ;;  %v648_v15 = vadd.f32 %v647_v8, %v617_v10  ;;  %553 = vst [vmem:[%s1019_s11 + $0x70] sm:$0xff] %v862_v11  ;;  %569 = vst [vmem:[%s1019_s11 + $0xf0] sm:$0xff] %v1081_v12  ;;  %v622_v35 = vmul.f32 %v862_v11, %v862_v11 }
 0x106   : > { %v460_v16 = vpop.f32.mrf.mxu0  ;;  %v524_v17 = vpop.f32.mrf.mxu1  ;;  %v633_v8 = vmul.f32 %v1076_v7, %v1076_v7 }
 0x107   : > { %v649_v19 = vadd.f32 %v648_v15, %v618_v13  ;;  %551 = vst [vmem:[%s1019_s11 + $0x60] sm:$0xff] %v460_v16  ;;  %v581_v20 = vadd.f32 %v859_v1, %v580_v14  ;;  %567 = vst [vmem:[%s1019_s11 + $0xe0] sm:$0xff] %v524_v17  ;;  %v620_v24 = vmul.f32 %v460_v16, %v460_v16 }
 0x108   : > { %v863_v21 = vpop.f32.mrf.mxu0  ;;  %v1088_v22 = vpop.f32.mrf.mxu1  ;;  %v636_v14 = vmul.f32 %v524_v17, %v524_v17 }
 0x109   : > { %v582_v23 = vadd.f32 %v581_v20, %v460_v16  ;;  %v650_v26 = vadd.f32 %v649_v19, %v619_v18  ;;  %554 = vst [vmem:[%s1019_s11 + $0x78] sm:$0xff] %v863_v21  ;;  %570 = vst [vmem:[%s1019_s11 + $0xf8] sm:$0xff] %v1088_v22  ;;  %v623_v39 = vmul.f32 %v863_v21, %v863_v21 }
 0x10a   : > { %v463_v28 = vpop.f32.mrf.mxu0  ;;  %v527_v30 = vpop.f32.mrf.mxu1 }
 0x10b   : > { %v651_v32 = vadd.f32 %v650_v26, %v620_v24  ;;  %552 = vst [vmem:[%s1019_s11 + $0x68] sm:$0xff] %v463_v28  ;;  %v583_v33 = vadd.f32 %v582_v23, %v463_v28  ;;  %v621_v34 = vmul.f32 %v463_v28, %v463_v28  ;;  %568 = vst [vmem:[%s1019_s11 + $0xe8] sm:$0xff] %v527_v30 }
 0x10c   : > { %v637_v19 = vmul.f32 %v527_v30, %v527_v30 }
 0x10d   : > { %v584_v37 = vadd.f32 %v862_v11, %v583_v33  ;;  %v652_v38 = vadd.f32 %v651_v32, %v621_v34  ;;  %v677_v32 = vlaneseq }
 0x10f   : > { %v585_v40 = vadd.f32 %v863_v21, %v584_v37  ;;  %v653_v42 = vadd.f32 %v652_v38, %v622_v35  ;;  %v639_v21 = vmul.f32 %v1088_v22, %v1088_v22  ;;  %v678_v37 = vshrl.u32 %v677_v32, 7 }
 0x111   : > { %v654_v44 = vadd.f32 %v653_v42, %v623_v39  ;;  %v586_v45 = vadd.f32 %v585_v40, %v1026_v27  ;;  %vm679_vm0 = vcmp.eq.s32.totalorder %v678_v37, 0  ;;  %vm681_vm1 = vcmp.eq.s32.totalorder %v678_v37, 1 }
 0x113   : > { %v587_v47 = vadd.f32 %v586_v45, %v1036_v31  ;;  %v655_v49 = vadd.f32 %v654_v44, %v624_v43 }
 0x115   : > { %v588_v52 = vadd.f32 %v1021_v25, %v587_v47  ;;  %v656_v53 = vadd.f32 %v655_v49, %v625_v48  ;;  %v630_v25 = vmul.f32 %v1041_v36, %v1041_v36 }
 0x117   : > { %v657_v55 = vadd.f32 %v656_v53, %v626_v50  ;;  %v589_v57 = vadd.f32 %v1031_v29, %v588_v52  ;;  %v631_v29 = vmul.f32 %v1051_v46, %v1051_v46 }
 0x119   : > { %v590_v27 = vadd.f32 %v589_v57, %v1046_v41  ;;  %v658_v59 = vadd.f32 %v657_v55, %v627_v54 }
 0x11b   : > { %v659_v31 = vadd.f32 %v658_v59, %v628_v58  ;;  %v591_v60 = vadd.f32 %v590_v27, %v1056_v51 }
 0x11d   : > { %v592_v63 = vadd.f32 %v1041_v36, %v591_v60  ;;  %v660_v0 = vadd.f32 %v659_v31, %v629_v62  ;;  %v634_v36 = vmul.f32 %v1061_v56, %v1061_v56 }
 0x11f   : > { %v661_v1 = vadd.f32 %v660_v0, %v630_v25  ;;  %v593_v3 = vadd.f32 %v1051_v46, %v592_v63  ;;  %v635_v46 = vmul.f32 %v1071_v2, %v1071_v2 }
 0x121   : > { %v594_v41 = vadd.f32 %v593_v3, %v1066_v61  ;;  %v662_v5 = vadd.f32 %v661_v1, %v631_v29 }
 0x123   : > { %v663_v6 = vadd.f32 %v662_v5, %v632_v4  ;;  %v595_v51 = vadd.f32 %v594_v41, %v1076_v7  ;;  %v638_v7 = vmul.f32 %v1081_v12, %v1081_v12 }
 0x125   : > { %v596_v9 = vadd.f32 %v1061_v56, %v595_v51  ;;  %v664_v10 = vadd.f32 %v663_v6, %v633_v8 }
 0x127   : > { %v665_v11 = vadd.f32 %v664_v10, %v634_v36  ;;  %v597_v13 = vadd.f32 %v1071_v2, %v596_v9 }
 0x129   : > { %v598_v61 = vadd.f32 %v597_v13, %v524_v17  ;;  %v666_v15 = vadd.f32 %v665_v11, %v635_v46 }
 0x12b   : > { %v667_v16 = vadd.f32 %v666_v15, %v636_v14  ;;  %v599_v18 = vadd.f32 %v598_v61, %v527_v30 }
 0x12d   : > { %v600_v56 = vadd.f32 %v1081_v12, %v599_v18  ;;  %v668_v20 = vadd.f32 %v667_v16, %v637_v19 }
 0x12f   : > { %v601_v23 = vadd.f32 %v1088_v22, %v600_v56  ;;  %v669_v2 = vadd.f32 %v668_v20, %v638_v7 }
 0x131   : > { %v602_v24 = vrot.slane %v601_v23, 4  ;;  %v670_v26 = vadd.f32 %v669_v2, %v639_v21 }
 0x133   : > { %v603_v17 = vadd.f32 %v602_v24, %v601_v23  ;;  %v671_v28 = vrot.slane %v670_v26, 4 }
 0x135   : > { %v604_v30 = vrot.slane %v603_v17, 2  ;;  %v672_v33 = vadd.f32 %v671_v28, %v670_v26 }
 0x137   : > { %v605_v34 = vadd.f32 %v604_v30, %v603_v17  ;;  %v673_v35 = vrot.slane %v672_v33, 2 }
 0x139   : > { %v606_v12 = vrot.slane %v605_v34, 1  ;;  %v674_v38 = vadd.f32 %v673_v35, %v672_v33 }
 0x13b   : > { %v607_v39 = vadd.f32 %v606_v12, %v605_v34  ;;  %v675_v40 = vrot.slane %v674_v38, 1 }
 0x13d   : > { %v676_v22 = vadd.f32 %v675_v40, %v674_v38  ;;  %v680_v42 = vsel %vm679_vm0, %v607_v39, 0.0 }
 0x13f   : > { %v682_v43 = vsel %vm681_vm1, %v676_v22, 0.0 }
 0x140   : > { %v683_v44 = vadd.f32 %v682_v43, %v680_v42 }
 0x142   : > { %684 = vst [vmem:[%s184_s17] sm:$0xff] %v683_v44 }
 0x143 PF: > { %s14_s12 = sadd.s32 1, %s934_s12  }
 0x144   : > { %p11_p5 = scmp.ge.s32.totalorder %s14_s12, 4  }
 0x146   :  { %13 = sbr.rel (!%p11_p5) target bundleno = 1 (0x1), region = 70 }

</bundles_post_ra>
